<compile_context>
chip_gen: v7x
topology: tpu7x:2x2x1
jax: 0.10.0
libtpu: 0.0.40
codegen_flags: <defaults>
</compile_context>

<pallas_src>
import functools

import jax
import jax.numpy as jnp
import numpy as np
from jax.experimental import pallas as pl
from jax.experimental.pallas import tpu as pltpu


def _round_up(x, m):
    return (x + m - 1) // m * m


def _spatial_attn_kernel(x1_ref, x2_ref,
                         wqk_ref, bqk_ref,
                         ssel_ref, eexp_ref,
                         wvp_ref, bvp_ref,
                         out_ref, *, mm_dtype):
    """One TM-row tile of the fused attention layer.

    x1_ref  : (TM, D)      query tokens
    x2_ref  : (TM, N*D)    lane-dense key/value slots (flat over (N, D))
    wqk_ref : (D, N*D)     scale * (Wq @ Wk^T), tiled N times along lanes
    bqk_ref : (1, N*D)     scale * (bq @ Wk^T), tiled N times
    ssel_ref: (N*D, N)     per-slot segment-sum selector (reduction on MXU)
    eexp_ref: (N, N*D)     one-hot expansion of p back to the flat layout
    wvp_ref : (N*D, D)     (Wv @ Wp) stacked N times along sublanes
    bvp_ref : (1, D)       bv @ Wp + bp
    """
    x1 = x1_ref[...]                                      # (TM, D)
    x2 = x2_ref[...]                                      # (TM, N*D)

    def mm(a, w_ref):                                     # MXU, f32 accumulate
        return jnp.dot(a.astype(mm_dtype), w_ref[...],
                       preferred_element_type=jnp.float32)

    # scores[m,n] = scale * x2[m,n,:] . (x1 @ Wq @ Wk^T + bq @ Wk^T)[m,:]
    # (the per-row constant scale*(q.bk) is dropped: softmax is shift-invariant)
    qk_rep = mm(x1, wqk_ref) + bqk_ref[...]               # (TM, N*D)
    scores = mm(x2 * qk_rep, ssel_ref)                    # (TM, N)

    # --- softmax over the N slots (tiny lane reductions) --------------------
    scores = scores - jnp.max(scores, axis=-1, keepdims=True)
    p = jnp.exp(scores)                                   # (TM, N)
    l = jnp.sum(p, axis=-1, keepdims=True)                # (TM, 1)
    inv = pl.reciprocal(l, approx=True)                   # EUP slot
    inv = inv * (2.0 - l * inv)                           # Newton -> full f32
    p = p * inv

    # out[m] = (sum_n p[m,n] * x2[m,n,:]) @ (Wv @ Wp) + (bv @ Wp + bp)
    # p expansion kept in f32 regardless of mm_dtype (preserves softmax weights).
    p_exp = jnp.dot(p, eexp_ref[...],
                    preferred_element_type=jnp.float32)   # (TM, N*D)
    out = mm(p_exp * x2, wvp_ref) + bvp_ref[...]          # (TM, D)
    out_ref[...] = out.astype(out_ref.dtype)


def spatial_attention(x1, x2, params, *, block_m=1024, mm_dtype=jnp.float32):
    """x1: (B, L, D), x2: (B, L, N, D) -> ((B, L, D), None)."""
    wq, bq, wk, bk, wv, bv, wp, bp = params
    B, L, D = x1.shape
    N = x2.shape[2]
    ND = N * D
    M = B * L
    scale = jnp.float32(D) ** -0.5

    # ---- fold the projection chains into constants (exact algebra, f32) ----
    wqk = (wq @ wk.T) * scale                 # (D, D)
    bqk = (bq @ wk.T) * scale                 # (1, D)
    wqk_rep = jnp.tile(wqk, (1, N))           # (D, N*D)   lane-replicated
    bqk_rep = jnp.tile(bqk, (1, N))           # (1, N*D)
    wvp = wv @ wp                             # (D, D)
    bvp = bv @ wp + bp                        # (1, D)
    wvp_big = jnp.tile(wvp, (N, 1))           # (N*D, D)   sublane-stacked
    eye = jnp.eye(N, dtype=jnp.float32)
    ssel = jnp.repeat(eye, D, axis=0)         # (N*D, N)   segment-sum selector
    eexp = jnp.repeat(eye, D, axis=1)         # (N, N*D)   one-hot expansion

    # Only operands that feed the MXU get the optional low-precision cast.
    wqk_rep = wqk_rep.astype(mm_dtype)
    wvp_big = wvp_big.astype(mm_dtype)
    ssel = ssel.astype(mm_dtype)

    # ---- row tiling ---------------------------------------------------------
    tm = max(8, _round_up(min(block_m, M), 8))
    if M > 8:
        # keep >=2 grid steps so both v7x TensorCores get work
        tm = min(tm, max(8, _round_up(pl.cdiv(M, 2), 8)))
    m_pad = _round_up(M, tm)

    x1f = x1.reshape(M, D)
    x2f = x2.reshape(M, ND)                   # lane-dense (contiguous, free)
    if m_pad != M:                            # ragged tail -> zero-pad, slice after
        x1f = jnp.pad(x1f, ((0, m_pad - M), (0, 0)))
        x2f = jnp.pad(x2f, ((0, m_pad - M), (0, 0)))

    row_spec = pl.BlockSpec((tm, D), lambda i: (i, 0))
    x2_spec = pl.BlockSpec((tm, ND), lambda i: (i, 0))

    def const_spec(shape):                    # VMEM-resident across all steps
        return pl.BlockSpec(shape, lambda i: (0, 0))

    kernel = functools.partial(_spatial_attn_kernel, mm_dtype=mm_dtype)
    out = pl.pallas_call(
        kernel,
        out_shape=jax.ShapeDtypeStruct((m_pad, D), x1.dtype),
        grid=(m_pad // tm,),
        in_specs=[row_spec, x2_spec,
                  const_spec((D, ND)), const_spec((1, ND)),   # Wqk_rep, bqk_rep
                  const_spec((ND, N)), const_spec((N, ND)),   # S, E
                  const_spec((ND, D)), const_spec((1, D))],   # Wvp_big, bvp
        out_specs=row_spec,
        compiler_params=pltpu.CompilerParams(
            dimension_semantics=("parallel",)),   # shard rows over v7x's 2 TCs
    )(x1f, x2f, wqk_rep, bqk_rep, ssel, eexp, wvp_big, bvp)

    return out[:M].reshape(B, L, D), None


def reference(x1, x2, params):
    """Pure-JAX reference mirroring the PyTorch forward (no rewrite)."""
    wq, bq, wk, bk, wv, bv, wp, bp = params
    D = x1.shape[-1]
    q = x1 @ wq + bq[0]                                   # (B, L, D)
    k = x2 @ wk + bk[0]                                   # (B, L, N, D)
    v = x2 @ wv + bv[0]                                   # (B, L, N, D)
    attn = jnp.einsum("bld,blnd->bln", q, k) * (D ** -0.5)
    p = jax.nn.softmax(attn, axis=-1)
    o = jnp.einsum("bln,blnd->bld", p, v)
    return o @ wp + bp[0]


def make_params(key, dim):
    ks = jax.random.split(key, 8)
    s = 1.0 / np.sqrt(dim)
    wq = jax.random.uniform(ks[0], (dim, dim), jnp.float32, -s, s)
    bq = jax.random.uniform(ks[1], (1, dim), jnp.float32, -s, s)
    wk = jax.random.uniform(ks[2], (dim, dim), jnp.float32, -s, s)
    bk = jax.random.uniform(ks[3], (1, dim), jnp.float32, -s, s)
    wv = jax.random.uniform(ks[4], (dim, dim), jnp.float32, -s, s)
    bv = jax.random.uniform(ks[5], (1, dim), jnp.float32, -s, s)
    wp = jax.random.uniform(ks[6], (dim, dim), jnp.float32, -s, s)
    bp = jax.random.uniform(ks[7], (1, dim), jnp.float32, -s, s)
    return (wq, bq, wk, bk, wv, bv, wp, bp)


if __name__ == "__main__":
    B, L, N, D = 2, 9, 8, 32   # batch, query tokens, kv slots per token, hidden dim

    key = jax.random.PRNGKey(0)
    k_x1, k_x2, k_p = jax.random.split(key, 3)
    x1 = jax.random.normal(k_x1, (B, L, D), jnp.float32)
    x2 = jax.random.normal(k_x2, (B, L, N, D), jnp.float32)
    params = make_params(k_p, D)

    # M=18 -> tm capped to 16 (>=2 grid steps), m_pad=32: exercises the
    # pipelined grid, resident fused weights, and the ragged-tail padding path.
    out, _ = spatial_attention(x1, x2, params)
    out = jax.block_until_ready(out)

    ref = jax.block_until_ready(reference(x1, x2, params))
    # Slightly loose vs exact-order tolerance: weight fusion + MXU selector
    # contractions reassociate fp ops (typical deviation ~1e-6).
    np.testing.assert_allclose(np.asarray(out), np.asarray(ref),
                               rtol=2e-4, atol=2e-5)

    print("KERNEL_OK")
</pallas_src>

<mosaic_0001>
module attributes {stable_mosaic.version = 11 : i64} {
  func.func @_spatial_attn_kernel(%arg0: i32, %arg1: memref<16x32xf32, #tpu.memory_space<vmem>>, %arg2: memref<16x256xf32, #tpu.memory_space<vmem>>, %arg3: memref<32x256xf32, #tpu.memory_space<vmem>>, %arg4: memref<1x256xf32, #tpu.memory_space<vmem>>, %arg5: memref<256x8xf32, #tpu.memory_space<vmem>>, %arg6: memref<8x256xf32, #tpu.memory_space<vmem>>, %arg7: memref<256x32xf32, #tpu.memory_space<vmem>>, %arg8: memref<1x32xf32, #tpu.memory_space<vmem>>, %arg9: memref<16x32xf32, #tpu.memory_space<vmem>>) attributes {dimension_semantics = [#tpu.dimension_semantics<parallel>], iteration_bounds = array<i64: 2>, scalar_prefetch = 0 : i64, scratch_operands = 0 : i64, tpu.core_type = #tpu.core_type<tc>, window_params = [{transform_indices = @transform_0, window_bounds = array<i64: 16, 32>}, {transform_indices = @transform_1, window_bounds = array<i64: 16, 256>}, {pipeline_mode = #tpu.pipeline_mode<synchronous>, transform_indices = @transform_2, window_bounds = array<i64: 32, 256>}, {pipeline_mode = #tpu.pipeline_mode<synchronous>, transform_indices = @transform_3, window_bounds = array<i64: 1, 256>}, {pipeline_mode = #tpu.pipeline_mode<synchronous>, transform_indices = @transform_4, window_bounds = array<i64: 256, 8>}, {pipeline_mode = #tpu.pipeline_mode<synchronous>, transform_indices = @transform_5, window_bounds = array<i64: 8, 256>}, {pipeline_mode = #tpu.pipeline_mode<synchronous>, transform_indices = @transform_6, window_bounds = array<i64: 256, 32>}, {pipeline_mode = #tpu.pipeline_mode<synchronous>, transform_indices = @transform_7, window_bounds = array<i64: 1, 32>}, {transform_indices = @transform_8, window_bounds = array<i64: 16, 32>}]} {
    %c0 = arith.constant 0 : index
    %c0_0 = arith.constant 0 : index
    %0 = vector.load %arg1[%c0, %c0_0] : memref<16x32xf32, #tpu.memory_space<vmem>>, vector<16x32xf32>
    %c0_1 = arith.constant 0 : index
    %c0_2 = arith.constant 0 : index
    %1 = vector.load %arg2[%c0_1, %c0_2] : memref<16x256xf32, #tpu.memory_space<vmem>>, vector<16x256xf32>
    %c0_3 = arith.constant 0 : index
    %c0_4 = arith.constant 0 : index
    %2 = vector.load %arg3[%c0_3, %c0_4] : memref<32x256xf32, #tpu.memory_space<vmem>>, vector<32x256xf32>
    %cst = arith.constant dense<0.000000e+00> : vector<16x256xf32>
    %3 = tpu.matmul %0, %2, %cst {dimension_numbers = #tpu.dot_dimension_numbers<[1], [0], [0], [1], [0, 0, 1, 1], [], []>} : vector<16x32xf32>, vector<32x256xf32>, vector<16x256xf32> -> vector<16x256xf32>
    %c0_5 = arith.constant 0 : index
    %c0_6 = arith.constant 0 : index
    %4 = vector.load %arg4[%c0_5, %c0_6] : memref<1x256xf32, #tpu.memory_space<vmem>>, vector<1x256xf32>
    %5 = vector.broadcast %4 : vector<1x256xf32> to vector<16x256xf32>
    %6 = arith.addf %3, %5 : vector<16x256xf32>
    %7 = arith.mulf %1, %6 : vector<16x256xf32>
    %c0_7 = arith.constant 0 : index
    %c0_8 = arith.constant 0 : index
    %8 = vector.load %arg5[%c0_7, %c0_8] : memref<256x8xf32, #tpu.memory_space<vmem>>, vector<256x8xf32>
    %cst_9 = arith.constant dense<0.000000e+00> : vector<16x8xf32>
    %9 = tpu.matmul %7, %8, %cst_9 {dimension_numbers = #tpu.dot_dimension_numbers<[1], [0], [0], [1], [0, 0, 1, 1], [], []>} : vector<16x256xf32>, vector<256x8xf32>, vector<16x8xf32> -> vector<16x8xf32>
    %cst_10 = arith.constant dense<0xFF800000> : vector<16xf32>
    %10 = vector.multi_reduction <maximumf>, %9, %cst_10 [1] : vector<16x8xf32> to vector<16xf32>
    %11 = vector.shape_cast %10 : vector<16xf32> to vector<16x1xf32>
    %12 = vector.broadcast %11 : vector<16x1xf32> to vector<16x8xf32>
    %13 = arith.subf %9, %12 : vector<16x8xf32>
    %14 = math.exp %13 : vector<16x8xf32>
    %cst_11 = arith.constant dense<0.000000e+00> : vector<16xf32>
    %15 = vector.multi_reduction <add>, %14, %cst_11 [1] : vector<16x8xf32> to vector<16xf32>
    %16 = vector.shape_cast %15 : vector<16xf32> to vector<16x1xf32>
    %17 = tpu.reciprocal %16 {approx = true} : vector<16x1xf32> -> vector<16x1xf32>
    %18 = arith.mulf %16, %17 : vector<16x1xf32>
    %cst_12 = arith.constant 2.000000e+00 : f32
    %19 = vector.broadcast %cst_12 : f32 to vector<16x1xf32>
    %20 = arith.subf %19, %18 : vector<16x1xf32>
    %21 = arith.mulf %17, %20 : vector<16x1xf32>
    %22 = vector.broadcast %21 : vector<16x1xf32> to vector<16x8xf32>
    %23 = arith.mulf %14, %22 : vector<16x8xf32>
    %c0_13 = arith.constant 0 : index
    %c0_14 = arith.constant 0 : index
    %24 = vector.load %arg6[%c0_13, %c0_14] : memref<8x256xf32, #tpu.memory_space<vmem>>, vector<8x256xf32>
    %cst_15 = arith.constant dense<0.000000e+00> : vector<16x256xf32>
    %25 = tpu.matmul %23, %24, %cst_15 {dimension_numbers = #tpu.dot_dimension_numbers<[1], [0], [0], [1], [0, 0, 1, 1], [], []>} : vector<16x8xf32>, vector<8x256xf32>, vector<16x256xf32> -> vector<16x256xf32>
    %26 = arith.mulf %25, %1 : vector<16x256xf32>
    %c0_16 = arith.constant 0 : index
    %c0_17 = arith.constant 0 : index
    %27 = vector.load %arg7[%c0_16, %c0_17] : memref<256x32xf32, #tpu.memory_space<vmem>>, vector<256x32xf32>
    %cst_18 = arith.constant dense<0.000000e+00> : vector<16x32xf32>
    %28 = tpu.matmul %26, %27, %cst_18 {dimension_numbers = #tpu.dot_dimension_numbers<[1], [0], [0], [1], [0, 0, 1, 1], [], []>} : vector<16x256xf32>, vector<256x32xf32>, vector<16x32xf32> -> vector<16x32xf32>
    %c0_19 = arith.constant 0 : index
    %c0_20 = arith.constant 0 : index
    %29 = vector.load %arg8[%c0_19, %c0_20] : memref<1x32xf32, #tpu.memory_space<vmem>>, vector<1x32xf32>
    %30 = vector.broadcast %29 : vector<1x32xf32> to vector<16x32xf32>
    %31 = arith.addf %28, %30 : vector<16x32xf32>
    %c0_21 = arith.constant 0 : index
    %c0_22 = arith.constant 0 : index
    %32 = vector.load %arg9[%c0_21, %c0_22] : memref<16x32xf32, #tpu.memory_space<vmem>>, vector<16x32xf32>
    tpu.vector_store %arg9[%c0_21, %c0_22], %31 {strides = array<i32>} : memref<16x32xf32, #tpu.memory_space<vmem>>, vector<16x32xf32>,
    return
  }
  func.func @transform_0(%arg0: i32) -> (i32, i32) {
    %c0_i32 = arith.constant 0 : i32
    %c0_i32_0 = arith.constant 0 : i32
    return %arg0, %c0_i32 : i32, i32
  }
  func.func @transform_1(%arg0: i32) -> (i32, i32) {
    %c0_i32 = arith.constant 0 : i32
    %c0_i32_0 = arith.constant 0 : i32
    return %arg0, %c0_i32 : i32, i32
  }
  func.func @transform_2(%arg0: i32) -> (i32, i32) {
    %c0_i32 = arith.constant 0 : i32
    %c0_i32_0 = arith.constant 0 : i32
    %c0_i32_1 = arith.constant 0 : i32
    return %c0_i32, %c0_i32_0 : i32, i32
  }
  func.func @transform_3(%arg0: i32) -> (i32, i32) {
    %c0_i32 = arith.constant 0 : i32
    %c0_i32_0 = arith.constant 0 : i32
    %c0_i32_1 = arith.constant 0 : i32
    return %c0_i32, %c0_i32_0 : i32, i32
  }
  func.func @transform_4(%arg0: i32) -> (i32, i32) {
    %c0_i32 = arith.constant 0 : i32
    %c0_i32_0 = arith.constant 0 : i32
    %c0_i32_1 = arith.constant 0 : i32
    return %c0_i32, %c0_i32_0 : i32, i32
  }
  func.func @transform_5(%arg0: i32) -> (i32, i32) {
    %c0_i32 = arith.constant 0 : i32
    %c0_i32_0 = arith.constant 0 : i32
    %c0_i32_1 = arith.constant 0 : i32
    return %c0_i32, %c0_i32_0 : i32, i32
  }
  func.func @transform_6(%arg0: i32) -> (i32, i32) {
    %c0_i32 = arith.constant 0 : i32
    %c0_i32_0 = arith.constant 0 : i32
    %c0_i32_1 = arith.constant 0 : i32
    return %c0_i32, %c0_i32_0 : i32, i32
  }
  func.func @transform_7(%arg0: i32) -> (i32, i32) {
    %c0_i32 = arith.constant 0 : i32
    %c0_i32_0 = arith.constant 0 : i32
    %c0_i32_1 = arith.constant 0 : i32
    return %c0_i32, %c0_i32_0 : i32, i32
  }
  func.func @transform_8(%arg0: i32) -> (i32, i32) {
    %c0_i32 = arith.constant 0 : i32
    %c0_i32_0 = arith.constant 0 : i32
    return %arg0, %c0_i32 : i32, i32
  }
}

</mosaic_0001>

<bundles_post_ra>
// kernel: tpu_custom_call.1
= control target key start
LH: loop header
LB: loop body
LE: loop exit
PB: predicated region body
PF: predicated region fallthrough
CT: control target
= control target key end

     0   :  { %13 = vsyncpa [#allocation3], 0  ;;  %s1575_s0 = inlined_call_operand.vmem [shape: f32[32,32], index: 0, kind: input, shape index: {}]   ;;  %s1576_s1 = inlined_call_operand.vmem [shape: f32[32,256], index: 1, kind: input, shape index: {}]   ;;  %s1577_s2 = inlined_call_operand.vmem [shape: f32[32,256], index: 2, kind: input, shape index: {}]   ;;  %s1578_s3 = inlined_call_operand.vmem [shape: f32[1,256], index: 3, kind: input, shape index: {}]   ;;  %s1579_s4 = inlined_call_operand.vmem [shape: f32[256,8], index: 4, kind: input, shape index: {}]   ;;  %s1580_s5 = inlined_call_operand.vmem [shape: f32[8,256], index: 5, kind: input, shape index: {}]   ;;  %s1581_s6 = inlined_call_operand.vmem [shape: f32[256,32], index: 6, kind: input, shape index: {}]   ;;  %s1582_s7 = inlined_call_operand.vmem [shape: f32[1,32], index: 7, kind: input, shape index: {}]   ;;  %s1583_s8 = inlined_call_operand.hbm [shape: f32[32,32], index: 8, kind: output, shape index: {}]  }
   0x1   :  { %15 = vsyncpa [#allocation3 + $0x1], 0  ;;  %s1208_s27 = smov 0   ;;  %s1210_s28 = smov 0  }
   0x2   :  { %s1212_s29 = smov 0   ;;  %s1214_s30 = smov 0  }
   0x3 LB: > { %s1229_s9 = sadd.s32 4294967295, %s1157_s30   ;;  %s875_s10 = sadd.s32 4294967294, %s1157_s30   ;;  %s1157_s30 = sphi %s1214_s30, %s1589_s30   ;;  %s1153_s29 = sphi %s1212_s29, %s1588_s29   ;;  %s1149_s28 = sphi %s1210_s28, %s1587_s28   ;;  %s1145_s27 = sphi %s1208_s27, %s1586_s27  }
   0x4   : > { %s1233_s11 = sadd.s32 1, %s1157_s30   ;;  %s206_s12 = sadd.s32 1, %s1153_s29 }
   0x5   : > { %s203_s13 = ssub.s32 %s1157_s30, %s1233_s11  ;;  %p216_p0 = scmp.ne.s32.totalorder %s1153_s29, %s1149_s28 }
   0x6   : > { %p204_p1 = scmp.eq.s32.totalorder %s203_s13, 0  ;;  %p217_p2 = scmp.eq.s32.totalorder %s1229_s9, 1 }
   0x7   : > { %p222_p3 = scmp.ne.s32.totalorder %s1149_s28, %s1145_s27  ;;  %p223_p4 = scmp.eq.s32.totalorder %s875_s10, 1 }
   0x8   : > { %s1244_s14 = scalar_select %p204_p1, %s1153_s29, %s206_s12  }
   0x9   : > { %p1246_p5 = por %p217_p2, %p216_p0  ;;  %p1250_p6 = por %p223_p4, %p222_p3 }
   0xa   : > { %p878_p7 = scmp.ge.s32.totalorder %s1157_s30, 1  ;;  %p278_p8 = scmp.lt.s32.totalorder %s1157_s30, 3 }
   0xc   : > { %p279_p9 = pnand %p878_p7, %p278_p8 }
   0xd   : > { %v339_v0 = vld [vmem:[%s1577_s2 + $0x8] sm:$0xff] (!%p279_p9)  ;;  %v341_v1 = vld [vmem:[%s1577_s2 + $0x18] sm:$0xff] (!%p279_p9)  ;;  %v338_v2 = vld [vmem:[%s1577_s2] sm:$0xff] (!%p279_p9)  ;;  %s880_s23 = sshll.u32 (!%p279_p9), %s1229_s9, 1  ;;  %v1159_v7 = vmov (!%p279_p9), 0.0   ;;  %vm358_vm0 = vcmask (!%p279_p9), 261120   ;;  %v348_v63 = vlaneseq (!%p279_p9) }
   0xe   : > { %282 = sbr.rel (%p279_p9) target bundleno = 1230 (0x4ce), region = 52  ;;  %v973_v3 = vpack.c.bf16 (!%p279_p9), %v341_v1, %v339_v0  ;;  %v340_v4 = vld [vmem:[%s1577_s2 + $0x10] sm:$0xff] (!%p279_p9)  ;;  %v343_v5 = vld [vmem:[%s1577_s2 + $0x28] sm:$0xff] (!%p279_p9)  ;;  %v345_v6 = vld [vmem:[%s1577_s2 + $0x38] sm:$0xff] (!%p279_p9)  ;;  %429 = vmatprep.mubr.f32.mxu1 (!%p279_p9), %v1159_v7  ;;  %p319_p10 = scmp.lt.s32.totalorder (!%p279_p9), %s880_s23, 3  ;;  %654 = vmatprep.mubr.f32.mxu0 (!%p279_p9), %v1159_v7  ;;  %vm553_vm1 = vcmask (!%p279_p9), 64512  }
   0xf   : > { %v975_v8 = vpack.c.bf16 (!%p279_p9), %v340_v4, %v338_v2  ;;  %v977_v9 = vpack.c.bf16 (!%p279_p9), %v345_v6, %v343_v5  ;;  %v342_v10 = vld [vmem:[%s1577_s2 + $0x20] sm:$0xff] (!%p279_p9)  ;;  %v344_v11 = vld [vmem:[%s1577_s2 + $0x30] sm:$0xff] (!%p279_p9)  ;;  %v463_v13 = vld [vmem:[%s1579_s4 + $0x88] sm:$0xff] (!%p279_p9)  ;;  %v349_v0 = vshrl.u32 (!%p279_p9), %v348_v63, 7  ;;  %s315_s12 = sand.u32 (!%p279_p9), 1, %s1149_s28   ;;  %s1160_s25 = smov (!%p279_p9), [#allocation2]  }
  0x10   : > { %v462_v12 = vld [vmem:[%s1579_s4 + $0x80] sm:$0xff] (!%p279_p9)  ;;  %974 = vmatprep.subr.bf16.mxu1 (!%p279_p9), %v973_v3  ;;  %v979_v14 = vpack.c.bf16 (!%p279_p9), %v344_v11, %v342_v10  ;;  %v447_v17 = vld [vmem:[%s1579_s4 + $0x8] sm:$0xff] (!%p279_p9)  ;;  %v464_v18 = vld [vmem:[%s1579_s4 + $0x90] sm:$0xff] (!%p279_p9)  ;;  %s879_s13 = sshll.u32 (!%p279_p9), %s315_s12, 4  ;;  %s1099_s10 = sshll.u32 (!%p279_p9), %s1160_s25, 4  ;;  %s1100_s10 = int_to_ptr.vmem [resolvable:$false] %s1099_s10 }
  0x11   : > { %976 = vmatpush1.bf16.msra.mxu1 (!%p279_p9), %v975_v8  ;;  %v981_v15 = vpack.c.bf16 (!%p279_p9), %v463_v13, %v462_v12  ;;  %v446_v16 = vld [vmem:[%s1579_s4] sm:$0xff] (!%p279_p9)  ;;  %v465_v19 = vld [vmem:[%s1579_s4 + $0x98] sm:$0xff] (!%p279_p9)  ;;  %v448_v23 = vld [vmem:[%s1579_s4 + $0x10] sm:$0xff] (!%p279_p9)  ;;  %v350_v1 = vsub.s32 (!%p279_p9), 0, %v349_v0  ;;  %v354_v3 = vsub.s32 (!%p279_p9), 1, %v349_v0 }
  0x12   : > { %978 = vmatprep.subr.bf16.mxu1 (!%p279_p9), %v977_v9  ;;  %v983_v21 = vpack.c.bf16 (!%p279_p9), %v447_v17, %v446_v16  ;;  %v985_v22 = vpack.c.bf16 (!%p279_p9), %v465_v19, %v464_v18  ;;  %v449_v24 = vld [vmem:[%s1579_s4 + $0x18] sm:$0xff] (!%p279_p9)  ;;  %v466_v25 = vld [vmem:[%s1579_s4 + $0xa0] sm:$0xff] (!%p279_p9)  ;;  %v467_v26 = vld [vmem:[%s1579_s4 + $0xa8] sm:$0xff] (!%p279_p9) }
  0x13   : > { %v987_v28 = vpack.c.bf16 (!%p279_p9), %v449_v24, %v448_v23  ;;  %v989_v29 = vpack.c.bf16 (!%p279_p9), %v467_v26, %v466_v25  ;;  %v450_v30 = vld [vmem:[%s1579_s4 + $0x20] sm:$0xff] (!%p279_p9)  ;;  %v451_v31 = vld [vmem:[%s1579_s4 + $0x28] sm:$0xff] (!%p279_p9)  ;;  %v468_v32 = vld [vmem:[%s1579_s4 + $0xb0] sm:$0xff] (!%p279_p9) }
  0x14   : > { %v469_v33 = vld [vmem:[%s1579_s4 + $0xb8] sm:$0xff] (!%p279_p9)  ;;  %v991_v34 = vpack.c.bf16 (!%p279_p9), %v451_v31, %v450_v30  ;;  %v452_v36 = vld [vmem:[%s1579_s4 + $0x30] sm:$0xff] (!%p279_p9)  ;;  %v470_v38 = vld [vmem:[%s1579_s4 + $0xc0] sm:$0xff] (!%p279_p9) }
  0x15   : > { %s1591_s23 = smov (!%p319_p10, %s880_s23), 3  ;;  %980 = vmatpush1.bf16.msra.mxu1 %v979_v14  ;;  %v993_v35 = vpack.c.bf16 %v469_v33, %v468_v32  ;;  %v453_v37 = vld [vmem:[%s1579_s4 + $0x38] sm:$0xff]  ;;  %v471_v39 = vld [vmem:[%s1579_s4 + $0xc8] sm:$0xff]  ;;  %v454_v42 = vld [vmem:[%s1579_s4 + $0x40] sm:$0xff] }
  0x16   : > { %s881_s26 = sshll.u32 %s1591_s23, 3  ;;  %982 = vmatprep.subr.bf16.mxu1 %v981_v15  ;;  %v995_v40 = vpack.c.bf16 %v453_v37, %v452_v36  ;;  %v997_v41 = vpack.c.bf16 %v471_v39, %v470_v38  ;;  %v455_v43 = vld [vmem:[%s1579_s4 + $0x48] sm:$0xff]  ;;  %v472_v44 = vld [vmem:[%s1579_s4 + $0xd0] sm:$0xff]  ;;  %v473_v45 = vld [vmem:[%s1579_s4 + $0xd8] sm:$0xff]  ;;  %s895_s19 = sshll.u32 %s1591_s23, 4 }
  0x17   : > { %s322_s20 = scalar_lea.vmem %s1575_s0, %s881_s26  ;;  %v999_v46 = vpack.c.bf16 %v455_v43, %v454_v42  ;;  %v1001_v47 = vpack.c.bf16 %v473_v45, %v472_v44  ;;  %v456_v48 = vld [vmem:[%s1579_s4 + $0x50] sm:$0xff]  ;;  %v457_v49 = vld [vmem:[%s1579_s4 + $0x58] sm:$0xff]  ;;  %v474_v50 = vld [vmem:[%s1579_s4 + $0xe0] sm:$0xff]  ;;  %s329_s24 = scalar_lea.vmem %s1576_s1, %s895_s19 }
  0x18   : > { %v332_v20 = vld [vmem:[%s322_s20] sm:$0xff]  ;;  %v333_v27 = vld [vmem:[%s322_s20 + $0x8] sm:$0xff]  ;;  %v1003_v52 = vpack.c.bf16 %v457_v49, %v456_v48  ;;  %v476_v57 = vld [vmem:[%s1579_s4 + $0xf0] sm:$0xff]  ;;  %s317_s20 = scalar_lea.vmem [#allocation2], %s879_s13  ;;  %s896_s19 = sshll.u32 %s1229_s9, 8 }
  0x19   : > { %885 = vmatmul.mubr.msk.f32.vlgmr.msra.gmra.mrb[0].mxu1 %vm358_vm0, %v332_v20  ;;  %v475_v51 = vld [vmem:[%s1579_s4 + $0xe8] sm:$0xff]  ;;  %v458_v54 = vld [vmem:[%s1579_s4 + $0x60] sm:$0xff]  ;;  %v477_v58 = vld [vmem:[%s1579_s4 + $0xf8] sm:$0xff]  ;;  %s801_s18 = sshll.u32 %s317_s20, 4  ;;  %s1534_s23 = scalar_lea.sflag [#allocation3], %s315_s12  ;;  %s1531_s18 = int_to_ptr.vmem [resolvable:$true] %s801_s18 }
  0x1a   : > { %435 = vmatprep.mubr.f32.mxu1 %v1159_v7  ;;  %984 = vmatpush3.bf16.msra.mxu1 %v983_v21  ;;  %v1005_v53 = vpack.c.bf16 %v475_v51, %v474_v50  ;;  %v459_v55 = vld [vmem:[%s1579_s4 + $0x68] sm:$0xff]  ;;  %v1009_v59 = vpack.c.bf16 %v477_v58, %v476_v57  ;;  %v460_v60 = vld [vmem:[%s1579_s4 + $0x70] sm:$0xff]  ;;  %v461_v61 = vld [vmem:[%s1579_s4 + $0x78] sm:$0xff]  ;;  %s1095_s9 = scalar_lea.vmem %s1531_s18, 256  ;;  %s1101_s13 = scalar_lea.vmem %s1100_s10, 512 }
  0x1b   : > { %986 = vmatprep.subr.bf16.mxu1 %v985_v22  ;;  %v1007_v56 = vpack.c.bf16 %v459_v55, %v458_v54  ;;  %v1011_v62 = vpack.c.bf16 %v461_v61, %v460_v60  ;;  %v346_v2 = vld [vmem:[%s1578_s3] sm:$0x3]  ;;  %v1395_v9 = vld [vmem:[%s329_s24 + $0x8] sm:$0xff]  ;;  %v1401_v17 = vld [vmem:[%s329_s24 + $0x18] sm:$0xff]  ;;  %p1096_p11 = scmp.ne.s32.totalorder %s1531_s18, %s1095_s9  ;;  %p1102_p0 = scmp.lt.s32.totalorder %s1531_s18, %s1100_s10 }
  0x1c   : > { %v351_v4 = vrot.slane %v346_v2, %v350_v1  ;;  %v355_v5 = vrot.slane %v346_v2, %v354_v3  ;;  %v1397_v11 = vld [vmem:[%s329_s24] sm:$0xff]  ;;  %v1403_v19 = vld [vmem:[%s329_s24 + $0x10] sm:$0xff]  ;;  %v688_v44 = vld [vmem:[%s1581_s6 + $0x88] sm:$0xff]  ;;  %s1529_s24 = scalar_lea.hbm %s1583_s8, %s896_s19  ;;  %p1103_p1 = scmp.lt.s32.totalorder %s1101_s13, %s1095_s9 }
  0x1d   : > { %886 = vmatmul.mubr.msk.f32.gmra.mrb[2].mxu1 %vm358_vm0, %v333_v27  ;;  %v582_v42 = vld [vmem:[%s1580_s5] sm:$0xff]  ;;  %v689_v54 = vld [vmem:[%s1581_s6 + $0x90] sm:$0xff]  ;;  %v690_v55 = vld [vmem:[%s1581_s6 + $0x98] sm:$0xff]  ;;  %p1097_p12 = pnand %p1096_p11, %p1246_p5 }
  0x1e   : > { %988 = vmatpush3.bf16.msra.mxu1 %v987_v28  ;;  %v687_v43 = vld [vmem:[%s1581_s6 + $0x80] sm:$0xff]  ;;  %v1017_v61 = vpack.c.bf16 %v690_v55, %v689_v54  ;;  %v674_v63 = vld [vmem:[%s1581_s6 + $0x18] sm:$0xff]  ;;  %v692_v1 = vld [vmem:[%s1581_s6 + $0xa8] sm:$0xff]  ;;  %p1104_p2 = por %p1103_p1, %p1102_p0 }
  0x1f   : > { %990 = vmatprep.subr.bf16.mxu1 %v989_v29  ;;  %v1013_v45 = vpack.c.bf16 %v688_v44, %v687_v43  ;;  %v671_v51 = vld [vmem:[%s1581_s6] sm:$0xff]  ;;  %p1098_p13 = pneg %p1097_p12 }
  0x20   : > { %v691_v0 = vld [vmem:[%s1581_s6 + $0xa0] sm:$0xff] }
  0x21   : > { %p1105_p3 = pnand %p1104_p2, %p1098_p13 }
  0x22   : > { %992 = vmatpush3.bf16.msra.mxu1 %v991_v34 }
  0x23   : > { %994 = vmatprep.subr.bf16.mxu1 %v993_v35 }
  0x26   : > { %996 = vmatpush3.bf16.msra.mxu1 %v995_v40 }
  0x27   : > { %998 = vmatprep.subr.bf16.mxu1 %v997_v41  ;;  %v583_v41 = vld [vmem:[%s1580_s5 + $0x8] sm:$0xff] }
  0x28   : > { %590 = vmatprep.subr.mxu0 %v583_v41  ;;  %v686_v41 = vld [vmem:[%s1581_s6 + $0x78] sm:$0xff] }
  0x29   : > { %591 = vmatpush1.msra.mxu0 %v582_v42 }
  0x2a   : > { %1000 = vmatpush3.bf16.msra.mxu1 %v999_v46  ;;  %1014 = vmatprep.subr.bf16.mxu0 %v1013_v45 }
  0x2b   : > { %1002 = vmatprep.subr.bf16.mxu1 %v1001_v47 }
  0x2e   : > { %1004 = vmatpush3.bf16.msra.mxu1 %v1003_v52  ;;  %v672_v52 = vld [vmem:[%s1581_s6 + $0x8] sm:$0xff] }
  0x2f   : > { %1006 = vmatprep.subr.bf16.mxu1 %v1005_v53  ;;  %v1015_v58 = vpack.c.bf16 %v672_v52, %v671_v51 }
  0x32   : > { %1008 = vmatpush3.bf16.msra.mxu1 %v1007_v56 }
  0x33   : > { %1010 = vmatprep.subr.bf16.mxu1 %v1009_v59 }
  0x36   : > { %1012 = vmatpush3.bf16.msra.mxu1 %v1011_v62  ;;  %v673_v62 = vld [vmem:[%s1581_s6 + $0x10] sm:$0xff] }
  0x37   : > { %v1019_v3 = vpack.c.bf16 %v674_v63, %v673_v62 }
  0xec   : > { %v431_v6 = vpop.f32.mrb[0].mxu1 }
  0xed   : > { %v432_v8 = vadd.f32 %v431_v6, %v351_v4  ;;  %v433_v10 = vpop.f32.mrb[1].mxu1  ;;  %v675_v6 = vld [vmem:[%s1581_s6 + $0x20] sm:$0xff] }
  0xee   : > { %v434_v12 = vadd.f32 %v433_v10, %v355_v5  ;;  %v693_v10 = vld [vmem:[%s1581_s6 + $0xb0] sm:$0xff] }
  0xef   : > { %v442_v15 = vmul.f32 %v432_v8, %v1397_v11  ;;  %v676_v8 = vld [vmem:[%s1581_s6 + $0x28] sm:$0xff] }
  0xf0   : > { %v443_v13 = vmul.f32 %v434_v12, %v1395_v9  ;;  %v437_v14 = vpop.f32.mrb[2].mxu1  ;;  %v1023_v12 = vpack.c.bf16 %v676_v8, %v675_v6 }
  0xf1   : > { %v438_v16 = vadd.f32 %v437_v14, %v351_v4  ;;  %v439_v18 = vpop.f32.mrb[3].mxu1  ;;  %v677_v14 = vld [vmem:[%s1581_s6 + $0x30] sm:$0xff] }
  0xf2   : > { %v440_v20 = vadd.f32 %v439_v18, %v355_v5  ;;  %542 = vmatprep.mubr.f32.mxu1 %v443_v13  ;;  %v1021_v5 = vpack.c.bf16 %v692_v1, %v691_v0  ;;  %v696_v18 = vld [vmem:[%s1581_s6 + $0xc8] sm:$0xff] }
  0xf3   : > { %543 = vmatmul.mubr.f32.vlgmr.msra.gmra.mrb[4].mxu1 %v442_v15  ;;  %v444_v22 = vmul.f32 %v438_v16, %v1403_v19  ;;  %v678_v15 = vld [vmem:[%s1581_s6 + $0x38] sm:$0xff]  ;;  %v695_v16 = vld [vmem:[%s1581_s6 + $0xc0] sm:$0xff] }
  0xf4   : > { %v445_v21 = vmul.f32 %v440_v20, %v1401_v17  ;;  %v1027_v20 = vpack.c.bf16 %v678_v15, %v677_v14 }
  0xf6   : > { %547 = vmatprep.mubr.f32.mxu1 %v445_v21  ;;  %v1029_v21 = vpack.c.bf16 %v696_v18, %v695_v16 }
  0xf7   : > { %548 = vmatmul.mubr.f32.gmra.mrb[6].mxu1 %v444_v22  ;;  %v679_v22 = vld [vmem:[%s1581_s6 + $0x40] sm:$0xff] }
 0x1c6   : > { %v929_v23 = vpop.f32.mrb[4].mxu1 }
 0x1c7   : > { %v930_v24 = vpop.f32.mrb[5].mxu1 }
 0x1c8   : > { %v931_v25 = vadd.f32 %v930_v24, %v929_v23  ;;  %v680_v23 = vld [vmem:[%s1581_s6 + $0x48] sm:$0xff]  ;;  %v697_v24 = vld [vmem:[%s1581_s6 + $0xd0] sm:$0xff] }
 0x1ca   : > { %v932_v26 = vpop.f32.mrb[6].mxu1  ;;  %v554_v27 = vsel %vm553_vm1, %v931_v25, -inf }
 0x1cb   : > { %v933_v28 = vpop.f32.mrb[7].mxu1  ;;  %555 = vmax.xlane.f32.xlu0 %v554_v27 }
 0x1cc   : > { %v934_v29 = vadd.f32 %v933_v28, %v932_v26  ;;  %v1031_v26 = vpack.c.bf16 %v680_v23, %v679_v22  ;;  %v681_v28 = vld [vmem:[%s1581_s6 + $0x50] sm:$0xff] }
 0x1ce   : > { %v557_v30 = vsel %vm553_vm1, %v934_v29, -inf }
 0x1cf   : > { %558 = vmax.xlane.f32.xlu0 %v557_v30  ;;  %v699_v30 = vld [vmem:[%s1581_s6 + $0xe0] sm:$0xff] }
 0x258   : > { %v556_v31 = vpop.xlane.xlu0 %555 }
 0x259   : > { %v560_v32 = vsub.f32 %v931_v25, %v556_v31  ;;  %v698_v25 = vld [vmem:[%s1581_s6 + $0xd8] sm:$0xff]  ;;  %v700_v31 = vld [vmem:[%s1581_s6 + $0xe8] sm:$0xff] }
 0x25a   : > { %v1033_v27 = vpack.c.bf16 %v698_v25, %v697_v24 }
 0x25b   : > { %v562_v33 = vmul.f32 1.442695, %v560_v32 }
 0x25c   : > { %v559_v34 = vpop.xlane.xlu0 %558 }
 0x25d   : > { %1087 = vpow2.f32 %v562_v33  ;;  %v561_v35 = vsub.f32 %v934_v29, %v559_v34  ;;  %v682_v29 = vld [vmem:[%s1581_s6 + $0x58] sm:$0xff]  ;;  %v1037_v33 = vpack.c.bf16 %v700_v31, %v699_v30  ;;  %v683_v34 = vld [vmem:[%s1581_s6 + $0x60] sm:$0xff] }
 0x25e   : > { %v1035_v32 = vpack.c.bf16 %v682_v29, %v681_v28 }
 0x25f   : > { %v564_v36 = vmul.f32 1.442695, %v561_v35  ;;  %v684_v35 = vld [vmem:[%s1581_s6 + $0x68] sm:$0xff] }
 0x261   : > { %1089 = vpow2.f32 %v564_v36  ;;  %v1039_v36 = vpack.c.bf16 %v684_v35, %v683_v34 }
 0x267   : > { %v1088_v37 = vpop.eup %1087 }
 0x268   : > { %v566_v38 = vsel %vm553_vm1, %v1088_v37, 0.0 }
 0x269   : > { %567 = vadd.xlane.f32.xlu1 %v566_v38  ;;  %v702_v38 = vld [vmem:[%s1581_s6 + $0xf8] sm:$0xff] }
 0x26b   : > { %v1090_v39 = vpop.eup %1089 }
 0x26c   : > { %v569_v40 = vsel %vm553_vm1, %v1090_v39, 0.0 }
 0x26d   : > { %570 = vadd.xlane.f32.xlu1 %v569_v40  ;;  %v685_v40 = vld [vmem:[%s1581_s6 + $0x70] sm:$0xff] }
 0x26e   : > { %v1043_v42 = vpack.c.bf16 %v686_v41, %v685_v40 }
 0x2f6   : > { %v568_v46 = vpop.xlane.xlu1 %567 }
 0x2f7   : > { %1091 = vrcp.f32 %v568_v46 }
 0x2fa   : > { %v571_v47 = vpop.xlane.xlu1 %570 }
 0x2fb   : > { %1093 = vrcp.f32 %v571_v47 }
 0x301   : > { %v1092_v48 = vpop.eup %1091 }
 0x302   : > { %v574_v49 = vmul.f32 %v1092_v48, %v568_v46 }
 0x304   : > { %v576_v50 = vsub.f32 2.0, %v574_v49 }
 0x305   : > { %v1094_v53 = vpop.eup %1093 }
 0x306   : > { %v578_v56 = vmul.f32 %v1092_v48, %v576_v50  ;;  %v575_v57 = vmul.f32 %v1094_v53, %v571_v47 }
 0x308   : > { %v580_v59 = vmul.f32 %v1088_v37, %v578_v56  ;;  %v577_v60 = vsub.f32 2.0, %v575_v57  ;;  %v701_v37 = vld [vmem:[%s1581_s6 + $0xf0] sm:$0xff] }
 0x30a   : > { %v579_v2 = vmul.f32 %v1094_v53, %v577_v60  ;;  %887 = vmatmul.mubr.msk.f32.vlgmr.msra.gmra.mrb[0].mxu0 %vm553_vm1, %v580_v59 }
 0x30b   : > { %660 = vmatprep.mubr.f32.mxu0 %v1159_v7  ;;  %1016 = vmatpush3.bf16.msra.mxu0 %v1015_v58  ;;  %v694_v7 = vld [vmem:[%s1581_s6 + $0xb8] sm:$0xff] }
 0x30c   : > { %v581_v4 = vmul.f32 %v1090_v39, %v579_v2  ;;  %1018 = vmatprep.subr.bf16.mxu0 %v1017_v61  ;;  %v1025_v13 = vpack.c.bf16 %v694_v7, %v693_v10  ;;  %v1041_v39 = vpack.c.bf16 %v702_v38, %v701_v37 }
 0x30e   : > { %888 = vmatmul.mubr.msk.f32.gmra.mrb[2].mxu0 %vm553_vm1, %v581_v4 }
 0x30f   : > { %1020 = vmatpush3.bf16.msra.mxu0 %v1019_v3 }
 0x310   : > { %1022 = vmatprep.subr.bf16.mxu0 %v1021_v5 }
 0x313   : > { %1024 = vmatpush3.bf16.msra.mxu0 %v1023_v12 }
 0x314   : > { %1026 = vmatprep.subr.bf16.mxu0 %v1025_v13 }
 0x317   : > { %1028 = vmatpush3.bf16.msra.mxu0 %v1027_v20 }
 0x318   : > { %1030 = vmatprep.subr.bf16.mxu0 %v1029_v21 }
 0x31b   : > { %1032 = vmatpush3.bf16.msra.mxu0 %v1031_v26 }
 0x31c   : > { %1034 = vmatprep.subr.bf16.mxu0 %v1033_v27 }
 0x31f   : > { %1036 = vmatpush3.bf16.msra.mxu0 %v1035_v32 }
 0x320   : > { %1038 = vmatprep.subr.bf16.mxu0 %v1037_v33 }
 0x323   : > { %1040 = vmatpush3.bf16.msra.mxu0 %v1039_v36 }
 0x324   : > { %1042 = vmatprep.subr.bf16.mxu0 %v1041_v39 }
 0x327   : > { %1044 = vmatpush3.bf16.msra.mxu0 %v1043_v42 }
 0x3dd   : > { %v656_v43 = vpop.f32.mrb[0].mxu0 }
 0x3de   : > { %v658_v44 = vpop.f32.mrb[1].mxu0  ;;  %v667_v46 = vmul.f32 %v656_v43, %v1397_v11 }
 0x3df   : > { %v668_v45 = vmul.f32 %v658_v44, %v1395_v9  ;;  %v889_v9 = vld [vmem:[%s1582_s7] ss:$0 sm:$0xff] }
 0x3e1   : > { %v662_v47 = vpop.f32.mrb[2].mxu0  ;;  %774 = vmatprep.mubr.f32.mxu0 %v668_v45 }
 0x3e2   : > { %v664_v48 = vpop.f32.mrb[3].mxu0  ;;  %775 = vmatmul.mubr.f32.vlgmr.msra.gmra.mrb[4].mxu0 %v667_v46  ;;  %v669_v50 = vmul.f32 %v662_v47, %v1403_v19 }
 0x3e3   : > { %v670_v49 = vmul.f32 %v664_v48, %v1401_v17 }
 0x3e5   : > { %779 = vmatprep.mubr.f32.mxu0 %v670_v49 }
 0x3e6   : > { %780 = vmatmul.mubr.f32.gmra.mrb[6].mxu0 %v669_v50 }
 0x4b5   : > { %v967_v51 = vpop.f32.mrb[4].mxu0 }
 0x4b6   : > { %v968_v52 = vpop.f32.mrb[5].mxu0 }
 0x4b7   : > { %v969_v11 = vadd.f32 %v968_v52, %v967_v51 }
 0x4b9   : > { %v777_v53 = vadd.f32 %v969_v11, %v889_v9  ;;  %v970_v54 = vpop.f32.mrb[6].mxu0 }
 0x4ba   : > { %v971_v17 = vpop.f32.mrb[7].mxu0 }
 0x4bb   : > { %785 = vst.msk [vmem:[%s317_s20] sm:$0xff] %vm358_vm0, %v777_v53  ;;  %v972_v19 = vadd.f32 %v971_v17, %v970_v54 }
 0x4bd   : > { %v782_v55 = vadd.f32 %v972_v19, %v889_v9 }
 0x4bf   : > { %786 = vst.msk [vmem:[%s317_s20 + $0x8] sm:$0xff] %vm358_vm0, %v782_v55 }
 0x4c0   : > { %1108 = shalt.err (!%p1105_p3)
}
 0x4c1   : > { %s1109_s12 = scalar_lea.hbm %s1529_s24, 256  ;;  %s1113_s20 = scalar_lea.hbm %s1583_s8, 512 }
 0x4c2   : > { %p1110_p4 = scmp.ne.s32.totalorder %s1529_s24, %s1109_s12  ;;  %p1114_p9 = scmp.lt.u32.totalorder %s1529_s24, %s1583_s8 }
 0x4c3   : > { %p1115_p10 = scmp.lt.u32.totalorder %s1113_s20, %s1109_s12  ;;  %p1117_p12 = scmp.lt.u32.totalorder %s1109_s12, %s1529_s24 }
 0x4c4   : > { %p1111_p7 = pnand %p1110_p4, %p1246_p5 }
 0x4c5   : > { %p1116_p11 = por %p1115_p10, %p1114_p9 }
 0x4c6   : > { %p1112_p8 = pneg %p1111_p7 }
 0x4c7   : > { %p1118_p13 = por %p1117_p12, %p1116_p11 }
 0x4c9   : > { %p1119_p0 = pnand %p1118_p13, %p1112_p8 }
 0x4cb   : > { %1122 = shalt.err (!%p1119_p0)
}
 0x4cc   : > { %s1161_s22 = smov 128   ;;  %s1162_s9 = smov 8  }
 0x4cd   : > { %1045 = dma.vmem_to_hbm [thread:$0]  (%p1246_p5), %s1531_s18, 256, %s1529_s24, %s1534_s23, %s1161_s22, %s1161_s22, %s1162_s9  }
 0x4ce PF: > { %p1051_p1 = scmp.ge.s32.totalorder %s1157_s30, 2  ;;  %s816_s25 = sand.u32 1, %s1145_s27  }
 0x4cf   : > { %s817_s10 = scalar_lea.sflag [#allocation3], %s816_s25 }
 0x4d0   : > { %p1048_p2 = pnand %p1051_p1, %p1250_p6 }
 0x4d2   : > { %1140 = dma.done.wait (!%p1048_p2), %s817_s10, 256  }
 0x4d3   : > { %1142 = vsyncadd (!%p1048_p2), %s817_s10, 4294967040  ;;  %p18_p3 = scmp.ge.s32.totalorder %s1233_s11, 4   ;;  %s1586_s27 = smov %s1149_s28 }
 0x4d4   : > { %s1587_s28 = smov %s1153_s29  ;;  %s1588_s29 = smov %s1244_s14 }
 0x4d5   : > { %s1589_s30 = smov %s1233_s11  ;;  %20 = sbr.rel (!%p18_p3) target bundleno = 3 (0x3), region = 90 }
 0x4dc   :  { %822 = vsyncpa [#allocation3], 1 }
 0x4dd   :  { %824 = vsyncpa [#allocation3 + $0x1], 1 }

</bundles_post_ra>
